<compile_context>
chip_gen: v5e
topology: v5e:2x2
jax: 0.10.0
libtpu: 0.0.40
codegen_flags: <defaults>
</compile_context>

<pallas_src>
import functools

import jax
import jax.numpy as jnp
from jax.experimental import pallas as pl
from jax.experimental.pallas import tpu as pltpu


def _round_up(n: int, m: int) -> int:
    return ((n + m - 1) // m) * m


def _logreg_kernel(w_ref, b_ref, xt_ref, ot_ref):
    # w_ref : SMEM [4]          -- row-major flatten of nn.Linear weight [2, 2]
    # b_ref : SMEM [2]          -- bias
    # xt_ref: VMEM [2, S, 128]  -- inputs, batch packed dense on (sublane, lane)
    # ot_ref: VMEM [2, S, 128]  -- log-probs, same packing
    w00 = w_ref[0]
    w01 = w_ref[1]
    w10 = w_ref[2]
    w11 = w_ref[3]
    b0 = b_ref[0]
    b1 = b_ref[1]

    x0 = xt_ref[0]                            # [S, 128] dense full vregs
    x1 = xt_ref[1]                            # [S, 128]

    # Linear layer on the VPU.
    y0 = w00 * x0 + w01 * x1 + b0             # logits class 0
    y1 = w10 * x0 + w11 * x1 + b1             # logits class 1

    # 2-class log_softmax closed form:
    #   out0 = -softplus(y1 - y0)
    #   out1 = -softplus(y0 - y1) = out0 + (y1 - y0)
    # stable softplus(t) = max(t, 0) + log1p(exp(-|t|)).
    d = y1 - y0
    out0 = -(jnp.maximum(d, 0.0) + jnp.log1p(jnp.exp(-jnp.abs(d))))
    ot_ref[0] = out0
    ot_ref[1] = out0 + d


@functools.partial(jax.jit, static_argnames=("block_rows",))
def logistic_regression_forward(x, w, b, block_rows: int = 2048):
    """x: [B, 2], w: [2, 2] (nn.Linear convention), b: [2]
    -> log_softmax(x @ w.T + b, axis=-1) as [B, 2] float32.

    block_rows = rows of 128 batch elements per grid step (2048 => 256K batch
    elems / ~4 MiB per step; 8 MiB double-buffered, fits all generations).
    """
    B, din = x.shape
    dout = w.shape[0]

    # --- dense 3-D batch packing: [Din, S_total, 128] --------------------
    rows_needed = pl.cdiv(B, 128)
    s_block = min(block_rows, _round_up(rows_needed, 8))   # sublane multiple of 8
    s_total = _round_up(rows_needed, s_block)
    b_pad = s_total * 128

    xt = jnp.pad(x.T.astype(jnp.float32), ((0, 0), (0, b_pad - B)))
    xt = xt.reshape(din, s_total, 128)

    w_flat = w.reshape(-1).astype(jnp.float32)   # [Dout*Din] = [4]
    b_flat = b.reshape(-1).astype(jnp.float32)   # [Dout]     = [2]

    grid = (s_total // s_block,)
    out3 = pl.pallas_call(
        _logreg_kernel,
        out_shape=jax.ShapeDtypeStruct((dout, s_total, 128), jnp.float32),
        grid_spec=pltpu.PrefetchScalarGridSpec(
            num_scalar_prefetch=0,
            grid=grid,
            in_specs=[
                # 6 parameter scalars live in SMEM (no VMEM pipelining).
                pl.BlockSpec(memory_space=pltpu.MemorySpace.SMEM),
                pl.BlockSpec(memory_space=pltpu.MemorySpace.SMEM),
                # x tiles streamed along the packed-batch (sublane) axis.
                pl.BlockSpec((din, s_block, 128), lambda i: (0, i, 0)),
            ],
            out_specs=pl.BlockSpec((dout, s_block, 128), lambda i: (0, i, 0)),
        ),
        compiler_params=pltpu.CompilerParams(
            dimension_semantics=("parallel",)),
    )(w_flat, b_flat, xt)

    # Back to the PyTorch-facing [B, Dout] layout.
    return out3.reshape(dout, b_pad)[:, :B].T


if __name__ == "__main__":
    key = jax.random.PRNGKey(0)
    kx, kw, kb = jax.random.split(key, 3)

    batch = 8
    in_features, out_features = 2, 2

    # Deterministic "parameters" (shapes from nn.Linear(2, 2)).
    w = jax.random.uniform(kw, (out_features, in_features), jnp.float32,
                           minval=-0.7071, maxval=0.7071)
    b = jax.random.uniform(kb, (out_features,), jnp.float32,
                           minval=-0.7071, maxval=0.7071)
    x = jax.random.normal(kx, (batch, in_features), jnp.float32)

    out = logistic_regression_forward(x, w, b)
    out = jax.block_until_ready(out)

    # Reference check in plain JAX.
    ref = jax.nn.log_softmax(x @ w.T + b, axis=-1)
    assert out.shape == (batch, out_features)
    assert jnp.allclose(out, ref, atol=1e-5, rtol=1e-5)

    print("KERNEL_OK")
</pallas_src>

<mosaic_0001>
module attributes {stable_mosaic.version = 11 : i64} {
  func.func @_logreg_kernel(%arg0: i32, %arg1: memref<4xf32, #tpu.memory_space<smem>>, %arg2: memref<2xf32, #tpu.memory_space<smem>>, %arg3: memref<2x8x128xf32, #tpu.memory_space<vmem>>, %arg4: memref<2x8x128xf32, #tpu.memory_space<vmem>>) attributes {dimension_semantics = [#tpu.dimension_semantics<parallel>], iteration_bounds = array<i64: 1>, scalar_prefetch = 0 : i64, scratch_operands = 0 : i64, tpu.core_type = #tpu.core_type<tc>, window_params = [{transform_indices = @transform_0, window_bounds = array<i64: 4>}, {transform_indices = @transform_1, window_bounds = array<i64: 2>}, {transform_indices = @transform_2, window_bounds = array<i64: 2, 8, 128>}, {transform_indices = @transform_3, window_bounds = array<i64: 2, 8, 128>}]} {
    %c0 = arith.constant 0 : index
    %0 = memref.load %arg1[%c0] : memref<4xf32, #tpu.memory_space<smem>>
    %c1 = arith.constant 1 : index
    %1 = memref.load %arg1[%c1] : memref<4xf32, #tpu.memory_space<smem>>
    %c2 = arith.constant 2 : index
    %2 = memref.load %arg1[%c2] : memref<4xf32, #tpu.memory_space<smem>>
    %c3 = arith.constant 3 : index
    %3 = memref.load %arg1[%c3] : memref<4xf32, #tpu.memory_space<smem>>
    %c0_0 = arith.constant 0 : index
    %4 = memref.load %arg2[%c0_0] : memref<2xf32, #tpu.memory_space<smem>>
    %c1_1 = arith.constant 1 : index
    %5 = memref.load %arg2[%c1_1] : memref<2xf32, #tpu.memory_space<smem>>
    %c0_2 = arith.constant 0 : index
    %c0_3 = arith.constant 0 : index
    %c0_4 = arith.constant 0 : index
    %6 = vector.load %arg3[%c0_2, %c0_3, %c0_4] : memref<2x8x128xf32, #tpu.memory_space<vmem>>, vector<1x8x128xf32>
    %7 = vector.shape_cast %6 : vector<1x8x128xf32> to vector<8x128xf32>
    %c1_5 = arith.constant 1 : index
    %c0_6 = arith.constant 0 : index
    %c0_7 = arith.constant 0 : index
    %8 = vector.load %arg3[%c1_5, %c0_6, %c0_7] : memref<2x8x128xf32, #tpu.memory_space<vmem>>, vector<1x8x128xf32>
    %9 = vector.shape_cast %8 : vector<1x8x128xf32> to vector<8x128xf32>
    %10 = vector.broadcast %0 : f32 to vector<8x128xf32>
    %11 = arith.mulf %10, %7 : vector<8x128xf32>
    %12 = vector.broadcast %1 : f32 to vector<8x128xf32>
    %13 = arith.mulf %12, %9 : vector<8x128xf32>
    %14 = arith.addf %11, %13 : vector<8x128xf32>
    %15 = vector.broadcast %4 : f32 to vector<8x128xf32>
    %16 = arith.addf %14, %15 : vector<8x128xf32>
    %17 = vector.broadcast %2 : f32 to vector<8x128xf32>
    %18 = arith.mulf %17, %7 : vector<8x128xf32>
    %19 = vector.broadcast %3 : f32 to vector<8x128xf32>
    %20 = arith.mulf %19, %9 : vector<8x128xf32>
    %21 = arith.addf %18, %20 : vector<8x128xf32>
    %22 = vector.broadcast %5 : f32 to vector<8x128xf32>
    %23 = arith.addf %21, %22 : vector<8x128xf32>
    %24 = arith.subf %23, %16 : vector<8x128xf32>
    %cst = arith.constant 0.000000e+00 : f32
    %25 = vector.broadcast %cst : f32 to vector<8x128xf32>
    %26 = arith.maximumf %24, %25 : vector<8x128xf32>
    %27 = math.absf %24 : vector<8x128xf32>
    %cst_8 = arith.constant 0.000000e+00 : f32
    %28 = vector.broadcast %cst_8 : f32 to vector<8x128xf32>
    %29 = arith.subf %28, %27 : vector<8x128xf32>
    %30 = math.exp %29 : vector<8x128xf32>
    %31 = math.log1p %30 : vector<8x128xf32>
    %32 = arith.addf %26, %31 : vector<8x128xf32>
    %cst_9 = arith.constant 0.000000e+00 : f32
    %33 = vector.broadcast %cst_9 : f32 to vector<8x128xf32>
    %34 = arith.subf %33, %32 : vector<8x128xf32>
    %c0_10 = arith.constant 0 : index
    %c0_11 = arith.constant 0 : index
    %c0_12 = arith.constant 0 : index
    %35 = vector.load %arg4[%c0_10, %c0_11, %c0_12] : memref<2x8x128xf32, #tpu.memory_space<vmem>>, vector<1x8x128xf32>
    %36 = vector.shape_cast %35 : vector<1x8x128xf32> to vector<8x128xf32>
    %37 = vector.shape_cast %34 : vector<8x128xf32> to vector<1x8x128xf32>
    tpu.vector_store %arg4[%c0_10, %c0_11, %c0_12], %37 {strides = array<i32>} : memref<2x8x128xf32, #tpu.memory_space<vmem>>, vector<1x8x128xf32>,
    %38 = arith.addf %34, %24 : vector<8x128xf32>
    %c1_13 = arith.constant 1 : index
    %c0_14 = arith.constant 0 : index
    %c0_15 = arith.constant 0 : index
    %39 = vector.load %arg4[%c1_13, %c0_14, %c0_15] : memref<2x8x128xf32, #tpu.memory_space<vmem>>, vector<1x8x128xf32>
    %40 = vector.shape_cast %39 : vector<1x8x128xf32> to vector<8x128xf32>
    %41 = vector.shape_cast %38 : vector<8x128xf32> to vector<1x8x128xf32>
    tpu.vector_store %arg4[%c1_13, %c0_14, %c0_15], %41 {strides = array<i32>} : memref<2x8x128xf32, #tpu.memory_space<vmem>>, vector<1x8x128xf32>,
    return
  }
  func.func @transform_0(%arg0: i32) -> i32 {
    %c0_i32 = arith.constant 0 : i32
    %c0_i32_0 = arith.constant 0 : i32
    return %c0_i32 : i32
  }
  func.func @transform_1(%arg0: i32) -> i32 {
    %c0_i32 = arith.constant 0 : i32
    %c0_i32_0 = arith.constant 0 : i32
    return %c0_i32 : i32
  }
  func.func @transform_2(%arg0: i32) -> (i32, i32, i32) {
    %c0_i32 = arith.constant 0 : i32
    %c0_i32_0 = arith.constant 0 : i32
    %c0_i32_1 = arith.constant 0 : i32
    return %c0_i32, %arg0, %c0_i32_0 : i32, i32, i32
  }
  func.func @transform_3(%arg0: i32) -> (i32, i32, i32) {
    %c0_i32 = arith.constant 0 : i32
    %c0_i32_0 = arith.constant 0 : i32
    %c0_i32_1 = arith.constant 0 : i32
    return %c0_i32, %arg0, %c0_i32_0 : i32, i32, i32
  }
}

</mosaic_0001>

<bundles_post_ra>
// kernel: logistic_regression_forward.1
= control target key start
LH: loop header
LB: loop body
LE: loop exit
PB: predicated region body
PF: predicated region fallthrough
CT: control target
= control target key end

     0   :  { %8 = vsyncpa [#allocation3], 0  ;;  %s169_s0 = inlined_call_operand.vmem [shape: f32[4], index: 0, kind: input, shape index: {}]   ;;  %s170_s1 = inlined_call_operand.vmem [shape: f32[2], index: 1, kind: input, shape index: {}]   ;;  %s171_s2 = inlined_call_operand.vmem [shape: f32[2,8,128], index: 2, kind: input, shape index: {}]   ;;  %s172_s3 = inlined_call_operand.vmem [shape: f32[2,8,128], index: 3, kind: output, shape index: {}]  }
   0x1   :  { %s15_s14 = sshll.u32 %s169_s0, 4  ;;  %s16_s14 = int_to_ptr.vmem [resolvable:$true] %s15_s14 }
   0x2   :  { %9 = vsyncpa [#allocation5], 0  ;;  %s24_s17 = sshll.u32 %s170_s1, 4  ;;  %s129_s18 = smov [#allocation2]   ;;  %s25_s17 = int_to_ptr.vmem [resolvable:$true] %s24_s17 }
   0x3   :  { %18 = dma.vmem_to_smem %s16_s14, 16, %s129_s18, [#allocation3]  }
   0x4   :  { %s130_s19 = smov [#allocation4]  }
   0x5   :  { %27 = dma.vmem_to_smem %s25_s17, 16, %s130_s19, [#allocation5]  }
   0x6   :  { %125 = dma.done.wait [#allocation3], 16  }
   0x7   :  { %126 = vsyncadd [#allocation3], 4294967280 }
   0x8   :  { %127 = dma.done.wait [#allocation5], 16  }
   0x9   :  { %128 = vsyncadd [#allocation5], 4294967280 }
   0xa   :  { %38 = sfence }
   0xb   :  { %s39_s20 = sld [smem:[#allocation2]]  ;;  %v45_v0 = vld [vmem:[%s171_s2] sm:$0xff]  ;;  %v93_v1 = vld [vmem:[%s171_s2 + $0x8] sm:$0xff] }
   0xc   :  { %s89_s21 = sld [smem:[#allocation2 + $0x1]] }
   0xd   :  { %s90_s22 = sld [smem:[#allocation2 + $0x2]] }
   0xe   :  { %s91_s0 = sld [smem:[#allocation2 + $0x3]] }
   0xf   :  { %s43_s23 = sld [smem:[#allocation4]] }
  0x10   :  { %s92_s1 = sld [smem:[#allocation4 + $0x1]] }
  0x11   :  { %v48_v2 = vstv %s39_s20 }
  0x12   :  { %v49_v3 = vmul.f32 %v48_v2, %v45_v0  ;;  %v50_v4 = vstv %s89_s21 }
  0x13   :  { %v51_v5 = vmul.f32 %v93_v1, %v50_v4  ;;  %v55_v6 = vstv %s90_s22 }
  0x14   :  { %v56_v7 = vmul.f32 %v55_v6, %v45_v0  ;;  %v57_v8 = vstv %s91_s0 }
  0x15   :  { %v52_v9 = vadd.f32 %v51_v5, %v49_v3  ;;  %v53_v10 = vstv %s43_s23  ;;  %v58_v11 = vmul.f32 %v93_v1, %v57_v8 }
  0x16   :  { %v60_v12 = vstv %s92_s1 }
  0x17   :  { %v54_v13 = vadd.f32 %v53_v10, %v52_v9  ;;  %v59_v14 = vadd.f32 %v58_v11, %v56_v7 }
  0x19   :  { %v61_v15 = vadd.f32 %v60_v12, %v59_v14 }
  0x1b   :  { %v62_v16 = vsub.f32 %v61_v15, %v54_v13 }
  0x1d   :  { %v64_v17 = vand.u32 2147483647, %v62_v16  ;;  %v63_v27 = vmax.f32 %v62_v16, 0.0 }
  0x1f   :  { %v65_v18 = vsub.f32 0.0, %v64_v17 }
  0x21   :  { %v66_v19 = vmul.f32 1.442695, %v65_v18 }
  0x23   :  { %97 = vpow2.f32 %v66_v19 }
  0x29   :  { %v98_v20 = vpop.eup %97 }
  0x2a   :  { %v68_v21 = vadd.f32 1.0, %v98_v20  ;;  %v71_v22 = vmul.f32 -0.5, %v98_v20  ;;  %v74_v24 = vand.u32 2147483647, %v98_v20 }
  0x2c   :  { %99 = vlog2.f32 %v68_v21  ;;  %v72_v23 = vadd.f32 1.0, %v71_v22  ;;  %vm75_vm0 = vcmp.lt.f32.partialorder %v74_v24, 0.0004427343 }
  0x2e   :  { %v73_v25 = vmul.f32 %v98_v20, %v72_v23 }
  0x32   :  { %v100_v26 = vpop.eup %99 }
  0x33   :  { %v70_v28 = vmul.f32 0.6931472, %v100_v26 }
  0x35   :  { %v76_v29 = vsel %vm75_vm0, %v73_v25, %v70_v28 }
  0x36   :  { %v77_v30 = vadd.f32 %v76_v29, %v63_v27 }
  0x38   :  { %v78_v31 = vsub.f32 0.0, %v77_v30 }
  0x3a   :  { %79 = vst [vmem:[%s172_s3] sm:$0xff] %v78_v31  ;;  %v80_v32 = vadd.f32 %v78_v31, %v62_v16 }
  0x3c   :  { %94 = vst [vmem:[%s172_s3 + $0x8] sm:$0xff] %v80_v32 }
  0x3d   :  { %87 = vsyncpa [#allocation3], 1 }
  0x3e   :  { %88 = vsyncpa [#allocation5], 1 }

</bundles_post_ra>
